<compile_context>
chip_gen: v7x
topology: tpu7x:2x2x1
jax: 0.10.0
libtpu: 0.0.40
codegen_flags: <defaults>
</compile_context>

<pallas_src>
import functools
import math

import jax
import jax.numpy as jnp
from jax.experimental import pallas as pl
from jax.experimental.pallas import tpu as pltpu


def _round_up(x, m):
    return ((x + m - 1) // m) * m


def _plan_k(K):
    """Padded K and K-tile. K <= 1024 -> single K step, no padding, no accumulators."""
    if K <= 1024:
        return K, K
    Kp = _round_up(K, 128)
    tk = next(t for t in (1024, 512, 256, 128) if Kp % t == 0)
    return Kp, tk


def _plan_n(N):
    """Padded N and N-tile. Lane-dense (128-multiple) tiles whenever possible."""
    if N % 128 == 0:
        Np = N
    elif N <= 512:
        Np = N          # small N: masked stores beat an extra pad+slice HBM round-trip
    else:
        Np = _round_up(N, 128)
    if Np % 128 == 0:
        tn = next(t for t in (512, 256, 128) if Np % t == 0)
    else:
        tn = Np
    return Np, tn


def _plan_m(M):
    """Adaptive M-tile: largest tile whose padding waste stays below ~12.5%."""
    for tm in (512, 256, 128, 64, 32, 16, 8):
        Mp = _round_up(M, tm)
        if Mp - M <= max(M // 8, 0):
            return Mp, tm
    return _round_up(M, 8), 8


def _make_kernel(output_type, multi_k):
    """Build the fused complex-linear kernel body.

    Ref order: x_re, x_im, w_re_t, w_im_t, b_diff[, b_sum], out..., acc...
    """
    has_im = output_type != "projection"
    n_in = 6 if has_im else 5
    n_out = 2 if output_type == "complex" else 1

    def kernel(*refs):
        in_refs = refs[:n_in]
        out_refs = refs[n_in:n_in + n_out]
        acc_refs = refs[n_in + n_out:]
        xre_ref, xim_ref, wre_ref, wim_ref, bd_ref = in_refs[:5]
        bs_ref = in_refs[5] if has_im else None

        def partial_sums():
            xre, xim = xre_ref[...], xim_ref[...]
            wre, wim = wre_ref[...], wim_ref[...]
            re = (jnp.dot(xre, wre, preferred_element_type=jnp.float32)
                  - jnp.dot(xim, wim, preferred_element_type=jnp.float32))
            if not has_im:
                return re, None
            im = (jnp.dot(xim, wre, preferred_element_type=jnp.float32)
                  + jnp.dot(xre, wim, preferred_element_type=jnp.float32))
            return re, im

        def finalize(re, im):
            re = re + bd_ref[...]
            if output_type == "projection":
                out_refs[0][...] = re.astype(out_refs[0].dtype)
                return
            im = im + bs_ref[...]
            if output_type == "complex":
                out_refs[0][...] = re.astype(out_refs[0].dtype)
                out_refs[1][...] = im.astype(out_refs[1].dtype)
            else:  # signed_norm: sign(re) * sqrt(re^2 + im^2)
                out_refs[0][...] = (jnp.sign(re) * jnp.sqrt(re * re + im * im)
                                    ).astype(out_refs[0].dtype)

        if not multi_k:
            # Single K step: accumulate directly in registers / MXU result path.
            re, im = partial_sums()
            finalize(re, im)
            return

        @pl.when(pl.program_id(2) == 0)
        def _():
            for acc in acc_refs:
                acc[...] = jnp.zeros_like(acc)

        re, im = partial_sums()
        acc_refs[0][...] += re
        if has_im:
            acc_refs[1][...] += im

        @pl.when(pl.program_id(2) == pl.num_programs(2) - 1)
        def _():
            finalize(acc_refs[0][...], acc_refs[1][...] if has_im else None)

    n_acc = (2 if has_im else 1) if multi_k else 0
    return kernel, n_acc


def pack_complex_linear_params(w_re, w_im, b_re, b_im, compute_dtype=None):
    """Pre-transpose / pad the weights and fold the biases ONCE.

    Do this at model-load time and reuse the result for every forward call; it
    removes a per-call transpose + pad HBM round trip. Optionally cast the weights
    to `compute_dtype` (e.g. jnp.bfloat16) for higher MXU throughput / half the
    weight HBM traffic; accumulation stays in f32 either way, biases stay f32.
    """
    N, K = w_re.shape
    Kp, _ = _plan_k(K)
    Np, _ = _plan_n(N)
    w_dtype = compute_dtype if compute_dtype is not None else w_re.dtype

    def prep_w(w):
        wt = jnp.transpose(w).astype(w_dtype)              # (K, N)
        return jnp.pad(wt, ((0, Kp - K), (0, Np - N)))     # (Kp, Np)

    def prep_b(b):
        return jnp.pad(b.reshape(1, N).astype(jnp.float32), ((0, 0), (0, Np - N)))

    return (prep_w(w_re), prep_w(w_im),
            prep_b(b_re - b_im),     # folded bias for the real output
            prep_b(b_re + b_im))     # folded bias for the imaginary output


@functools.partial(jax.jit, static_argnames=("out_features", "output_type"))
def complex_linear_packed(in_re, in_im, w_re_t, w_im_t, b_diff, b_sum,
                          out_features, output_type="complex"):
    """Fused complex linear layer on pre-packed weights.

    in_re, in_im : (..., K) activations.
    w_re_t/w_im_t: (Kp, Np) pre-packed weights (pack_complex_linear_params).
    b_diff/b_sum : (1, Np) folded biases (f32).
    """
    if output_type not in ("complex", "projection", "signed_norm"):
        raise ValueError(f"Unsupported output_type: {output_type}")

    orig_shape = in_re.shape
    K = orig_shape[-1]
    N = out_features
    M = math.prod(orig_shape[:-1]) if len(orig_shape) > 1 else 1
    out_dtype = in_re.dtype

    Kp, tk = _plan_k(K)
    Np, tn = _plan_n(N)
    Mp, tm = _plan_m(M)

    # v7x has 2 TensorCores: make sure there are >= 2 parallel output tiles.
    if (Mp // tm) * (Np // tn) == 1:
        if tn % 256 == 0:
            tn //= 2
        elif tm % 16 == 0:
            tm //= 2

    # Activations go in as two separate operands (no concat slab); pad only if needed.
    x_re = in_re.reshape(M, K).astype(w_re_t.dtype)
    x_im = in_im.reshape(M, K).astype(w_re_t.dtype)
    if Mp > M or Kp > K:
        pad = ((0, Mp - M), (0, Kp - K))
        x_re = jnp.pad(x_re, pad)
        x_im = jnp.pad(x_im, pad)

    n_i, n_j, n_k = Mp // tm, Np // tn, Kp // tk
    multi_k = n_k > 1
    kernel, n_acc = _make_kernel(output_type, multi_k)

    x_spec = pl.BlockSpec((tm, tk), lambda i, j, k: (i, k))
    w_spec = pl.BlockSpec((tk, tn), lambda i, j, k: (k, j))
    b_spec = pl.BlockSpec((1, tn), lambda i, j, k: (0, j))
    o_spec = pl.BlockSpec((tm, tn), lambda i, j, k: (i, j))

    has_im = output_type != "projection"
    inputs = [x_re, x_im, w_re_t, w_im_t, b_diff] + ([b_sum] if has_im else [])
    in_specs = [x_spec, x_spec, w_spec, w_spec, b_spec] + ([b_spec] if has_im else [])

    n_out = 2 if output_type == "complex" else 1
    out_shape = tuple(jax.ShapeDtypeStruct((Mp, Np), out_dtype) for _ in range(n_out))
    out_specs = tuple(o_spec for _ in range(n_out))

    x_bytes = x_re.dtype.itemsize
    w_bytes = w_re_t.dtype.itemsize
    o_bytes = jnp.dtype(out_dtype).itemsize
    n_dots = 4 if has_im else 2
    cost = pl.CostEstimate(
        flops=2 * n_dots * Mp * Kp * Np,
        transcendentals=Mp * Np if output_type == "signed_norm" else 0,
        bytes_accessed=(2 * Mp * Kp * x_bytes + 2 * Kp * Np * w_bytes
                        + n_out * Mp * Np * o_bytes))

    out = pl.pallas_call(
        kernel,
        out_shape=out_shape,
        grid_spec=pltpu.PrefetchScalarGridSpec(
            num_scalar_prefetch=0,
            grid=(n_i, n_j, n_k),
            in_specs=in_specs,
            out_specs=out_specs,
            scratch_shapes=[pltpu.VMEM((tm, tn), jnp.float32)] * n_acc),
        compiler_params=pltpu.CompilerParams(
            dimension_semantics=("parallel", "parallel", "arbitrary")),
        cost_estimate=cost,
    )(*inputs)

    def unpad(y):
        if Mp > M or Np > N:
            y = y[:M, :N]
        return y.reshape(orig_shape[:-1] + (N,))

    if output_type == "complex":
        return unpad(out[0]), unpad(out[1])
    return unpad(out[0])


def complex_linear(in_re, in_im, w_re, w_im, b_re, b_im, output_type="complex",
                   compute_dtype=None):
    """One-shot convenience wrapper (packs weights per call).

    For inference hot loops, call pack_complex_linear_params once and reuse
    complex_linear_packed instead.
    """
    packed = pack_complex_linear_params(w_re, w_im, b_re, b_im, compute_dtype)
    return complex_linear_packed(in_re, in_im, *packed,
                                 out_features=w_re.shape[0],
                                 output_type=output_type)


def _reference(in_re, in_im, w_re, w_im, b_re, b_im):
    lin_re = lambda x: x @ w_re.T + b_re
    lin_im = lambda x: x @ w_im.T + b_im
    out_re = lin_re(in_re) - lin_im(in_im)
    out_im = lin_re(in_im) + lin_im(in_re)
    return out_re, out_im


if __name__ == "__main__":
    key = jax.random.PRNGKey(0)
    k_inre, k_inim, k_wre, k_bre, k_wim = jax.random.split(key, 5)

    batch, seq, in_features, out_features = 2, 8, 32, 32

    # Deterministic parameter init mirroring the PyTorch module:
    # linear_re: default uniform Linear init; linear_im: normal(0, 0.02) weight, zero bias.
    bound = 1.0 / jnp.sqrt(in_features)
    w_re = jax.random.uniform(k_wre, (out_features, in_features),
                              minval=-bound, maxval=bound, dtype=jnp.float32)
    b_re = jax.random.uniform(k_bre, (out_features,),
                              minval=-bound, maxval=bound, dtype=jnp.float32)
    w_im = 0.02 * jax.random.normal(k_wim, (out_features, in_features), dtype=jnp.float32)
    b_im = jnp.zeros((out_features,), dtype=jnp.float32)

    in_re = jax.random.normal(k_inre, (batch, seq, in_features), dtype=jnp.float32)
    in_im = jax.random.normal(k_inim, (batch, seq, in_features), dtype=jnp.float32)

    ref_re, ref_im = _reference(in_re, in_im, w_re, w_im, b_re, b_im)

    # Pack weights ONCE (cached-inference path) and reuse for every call.
    packed = pack_complex_linear_params(w_re, w_im, b_re, b_im)

    out_re, out_im = complex_linear_packed(in_re, in_im, *packed,
                                           out_features=out_features,
                                           output_type="complex")
    jax.block_until_ready((out_re, out_im))
    assert jnp.allclose(out_re, ref_re, atol=1e-5, rtol=1e-5)
    assert jnp.allclose(out_im, ref_im, atol=1e-5, rtol=1e-5)

    proj = complex_linear_packed(in_re, in_im, *packed,
                                 out_features=out_features, output_type="projection")
    snorm = complex_linear_packed(in_re, in_im, *packed,
                                  out_features=out_features, output_type="signed_norm")
    jax.block_until_ready((proj, snorm))
    assert jnp.allclose(proj, ref_re, atol=1e-5, rtol=1e-5)
    ref_snorm = jnp.sign(ref_re) * jnp.sqrt(ref_re ** 2 + ref_im ** 2)
    assert jnp.allclose(snorm, ref_snorm, atol=1e-5, rtol=1e-5)

    # bf16 weights + activations (f32 accumulation): half the weight HBM traffic,
    # ~3-4x MXU throughput on v5e/v6e, fp-friendly on v7x.
    packed_bf16 = pack_complex_linear_params(w_re, w_im, b_re, b_im,
                                             compute_dtype=jnp.bfloat16)
    bre16, bim16 = complex_linear_packed(in_re, in_im, *packed_bf16,
                                         out_features=out_features,
                                         output_type="complex")
    jax.block_until_ready((bre16, bim16))
    assert jnp.allclose(bre16, ref_re, atol=1e-1)
    assert jnp.allclose(bim16, ref_im, atol=1e-1)

    # Convenience (per-call packing) wrapper still matches.
    cre, cim = complex_linear(in_re, in_im, w_re, w_im, b_re, b_im)
    jax.block_until_ready((cre, cim))
    assert jnp.allclose(cre, ref_re, atol=1e-5, rtol=1e-5)
    assert jnp.allclose(cim, ref_im, atol=1e-5, rtol=1e-5)

    print("KERNEL_OK")
</pallas_src>

<mosaic_0001>
module attributes {stable_mosaic.version = 11 : i64} {
  func.func @kernel(%arg0: i32, %arg1: i32, %arg2: i32, %arg3: memref<8x32xf32, #tpu.memory_space<vmem>>, %arg4: memref<8x32xf32, #tpu.memory_space<vmem>>, %arg5: memref<32x32xf32, #tpu.memory_space<vmem>>, %arg6: memref<32x32xf32, #tpu.memory_space<vmem>>, %arg7: memref<1x32xf32, #tpu.memory_space<vmem>>, %arg8: memref<1x32xf32, #tpu.memory_space<vmem>>, %arg9: memref<8x32xf32, #tpu.memory_space<vmem>>, %arg10: memref<8x32xf32, #tpu.memory_space<vmem>>) attributes {dimension_semantics = [#tpu.dimension_semantics<parallel>, #tpu.dimension_semantics<parallel>, #tpu.dimension_semantics<arbitrary>], iteration_bounds = array<i64: 2, 1, 1>, scalar_prefetch = 0 : i64, scratch_operands = 0 : i64, tpu.core_type = #tpu.core_type<tc>, window_params = [{transform_indices = @transform_0, window_bounds = array<i64: 8, 32>}, {transform_indices = @transform_1, window_bounds = array<i64: 8, 32>}, {transform_indices = @transform_2, window_bounds = array<i64: 32, 32>}, {transform_indices = @transform_3, window_bounds = array<i64: 32, 32>}, {transform_indices = @transform_4, window_bounds = array<i64: 1, 32>}, {transform_indices = @transform_5, window_bounds = array<i64: 1, 32>}, {transform_indices = @transform_6, window_bounds = array<i64: 8, 32>}, {transform_indices = @transform_7, window_bounds = array<i64: 8, 32>}]} {
    %c0 = arith.constant 0 : index
    %c0_0 = arith.constant 0 : index
    %0 = vector.load %arg3[%c0, %c0_0] : memref<8x32xf32, #tpu.memory_space<vmem>>, vector<8x32xf32>
    %c0_1 = arith.constant 0 : index
    %c0_2 = arith.constant 0 : index
    %1 = vector.load %arg4[%c0_1, %c0_2] : memref<8x32xf32, #tpu.memory_space<vmem>>, vector<8x32xf32>
    %c0_3 = arith.constant 0 : index
    %c0_4 = arith.constant 0 : index
    %2 = vector.load %arg5[%c0_3, %c0_4] : memref<32x32xf32, #tpu.memory_space<vmem>>, vector<32x32xf32>
    %c0_5 = arith.constant 0 : index
    %c0_6 = arith.constant 0 : index
    %3 = vector.load %arg6[%c0_5, %c0_6] : memref<32x32xf32, #tpu.memory_space<vmem>>, vector<32x32xf32>
    %cst = arith.constant dense<0.000000e+00> : vector<8x32xf32>
    %4 = tpu.matmul %0, %2, %cst {dimension_numbers = #tpu.dot_dimension_numbers<[1], [0], [0], [1], [0, 0, 1, 1], [], []>} : vector<8x32xf32>, vector<32x32xf32>, vector<8x32xf32> -> vector<8x32xf32>
    %cst_7 = arith.constant dense<0.000000e+00> : vector<8x32xf32>
    %5 = tpu.matmul %1, %3, %cst_7 {dimension_numbers = #tpu.dot_dimension_numbers<[1], [0], [0], [1], [0, 0, 1, 1], [], []>} : vector<8x32xf32>, vector<32x32xf32>, vector<8x32xf32> -> vector<8x32xf32>
    %6 = arith.subf %4, %5 : vector<8x32xf32>
    %cst_8 = arith.constant dense<0.000000e+00> : vector<8x32xf32>
    %7 = tpu.matmul %1, %2, %cst_8 {dimension_numbers = #tpu.dot_dimension_numbers<[1], [0], [0], [1], [0, 0, 1, 1], [], []>} : vector<8x32xf32>, vector<32x32xf32>, vector<8x32xf32> -> vector<8x32xf32>
    %cst_9 = arith.constant dense<0.000000e+00> : vector<8x32xf32>
    %8 = tpu.matmul %0, %3, %cst_9 {dimension_numbers = #tpu.dot_dimension_numbers<[1], [0], [0], [1], [0, 0, 1, 1], [], []>} : vector<8x32xf32>, vector<32x32xf32>, vector<8x32xf32> -> vector<8x32xf32>
    %9 = arith.addf %7, %8 : vector<8x32xf32>
    %c0_10 = arith.constant 0 : index
    %c0_11 = arith.constant 0 : index
    %10 = vector.load %arg7[%c0_10, %c0_11] : memref<1x32xf32, #tpu.memory_space<vmem>>, vector<1x32xf32>
    %11 = vector.broadcast %10 : vector<1x32xf32> to vector<8x32xf32>
    %12 = arith.addf %6, %11 : vector<8x32xf32>
    %c0_12 = arith.constant 0 : index
    %c0_13 = arith.constant 0 : index
    %13 = vector.load %arg8[%c0_12, %c0_13] : memref<1x32xf32, #tpu.memory_space<vmem>>, vector<1x32xf32>
    %14 = vector.broadcast %13 : vector<1x32xf32> to vector<8x32xf32>
    %15 = arith.addf %9, %14 : vector<8x32xf32>
    %c0_14 = arith.constant 0 : index
    %c0_15 = arith.constant 0 : index
    %16 = vector.load %arg9[%c0_14, %c0_15] : memref<8x32xf32, #tpu.memory_space<vmem>>, vector<8x32xf32>
    tpu.vector_store %arg9[%c0_14, %c0_15], %12 {strides = array<i32>} : memref<8x32xf32, #tpu.memory_space<vmem>>, vector<8x32xf32>,
    %c0_16 = arith.constant 0 : index
    %c0_17 = arith.constant 0 : index
    %17 = vector.load %arg10[%c0_16, %c0_17] : memref<8x32xf32, #tpu.memory_space<vmem>>, vector<8x32xf32>
    tpu.vector_store %arg10[%c0_16, %c0_17], %15 {strides = array<i32>} : memref<8x32xf32, #tpu.memory_space<vmem>>, vector<8x32xf32>,
    return
  }
  func.func @transform_0(%arg0: i32, %arg1: i32, %arg2: i32) -> (i32, i32) {
    %c0_i32 = arith.constant 0 : i32
    return %arg0, %arg2 : i32, i32
  }
  func.func @transform_1(%arg0: i32, %arg1: i32, %arg2: i32) -> (i32, i32) {
    %c0_i32 = arith.constant 0 : i32
    return %arg0, %arg2 : i32, i32
  }
  func.func @transform_2(%arg0: i32, %arg1: i32, %arg2: i32) -> (i32, i32) {
    %c0_i32 = arith.constant 0 : i32
    return %arg2, %arg1 : i32, i32
  }
  func.func @transform_3(%arg0: i32, %arg1: i32, %arg2: i32) -> (i32, i32) {
    %c0_i32 = arith.constant 0 : i32
    return %arg2, %arg1 : i32, i32
  }
  func.func @transform_4(%arg0: i32, %arg1: i32, %arg2: i32) -> (i32, i32) {
    %c0_i32 = arith.constant 0 : i32
    %c0_i32_0 = arith.constant 0 : i32
    return %c0_i32, %arg1 : i32, i32
  }
  func.func @transform_5(%arg0: i32, %arg1: i32, %arg2: i32) -> (i32, i32) {
    %c0_i32 = arith.constant 0 : i32
    %c0_i32_0 = arith.constant 0 : i32
    return %c0_i32, %arg1 : i32, i32
  }
  func.func @transform_6(%arg0: i32, %arg1: i32, %arg2: i32) -> (i32, i32) {
    %c0_i32 = arith.constant 0 : i32
    return %arg0, %arg1 : i32, i32
  }
  func.func @transform_7(%arg0: i32, %arg1: i32, %arg2: i32) -> (i32, i32) {
    %c0_i32 = arith.constant 0 : i32
    return %arg0, %arg1 : i32, i32
  }
}

</mosaic_0001>

<bundles_post_ra>
// kernel: complex_linear_packed.1
= control target key start
LH: loop header
LB: loop body
LE: loop exit
PB: predicated region body
PF: predicated region fallthrough
CT: control target
= control target key end

     0   :  { %s1848_s0 = inlined_call_operand.hbm [shape: f32[16,32], index: 0, kind: input, shape index: {}]   ;;  %s1849_s1 = inlined_call_operand.hbm [shape: f32[16,32], index: 1, kind: input, shape index: {}]   ;;  %s1850_s2 = inlined_call_operand.hbm [shape: f32[32,32], index: 2, kind: input, shape index: {}]   ;;  %s1851_s3 = inlined_call_operand.hbm [shape: f32[32,32], index: 3, kind: input, shape index: {}]   ;;  %s1852_s4 = inlined_call_operand.vmem [shape: f32[1,32], index: 4, kind: input, shape index: {}]   ;;  %s1853_s5 = inlined_call_operand.vmem [shape: f32[1,32], index: 5, kind: input, shape index: {}]   ;;  %s1854_s6 = inlined_call_operand.hbm [shape: f32[16,32], index: 6, kind: output, shape index: {0}]   ;;  %s1855_s7 = inlined_call_operand.hbm [shape: f32[16,32], index: 7, kind: output, shape index: {1}]  }
   0x1   :  { %1863 = sst [smem:[#allocation23_spill]] %s1850_s2 }
   0x2   :  { %1864 = sst [smem:[#allocation24_spill]] %s1851_s3 }
   0x3   :  { %13 = vsyncpa [#allocation3], 0 }
   0x4   :  { %15 = vsyncpa [#allocation3 + $0x1], 0 }
   0x5   :  { %16 = vsyncpa [#allocation6], 0 }
   0x6   :  { %18 = vsyncpa [#allocation6 + $0x1], 0 }
   0x7   :  { %19 = vsyncpa [#allocation9], 0 }
   0x8   :  { %20 = vsyncpa [#allocation4], 0 }
   0x9   :  { %22 = vsyncpa [#allocation4 + $0x1], 0 }
   0xa   :  { %23 = vsyncpa [#allocation12], 0 }
   0xb   :  { %25 = vsyncpa [#allocation12 + $0x1], 0  ;;  %s1505_s24 = smov 0   ;;  %s1507_s25 = smov 0  }
   0xc   :  { %s1509_s26 = smov 0   ;;  %s1511_s27 = smov 0  }
   0xd   :  { %s1513_s28 = smov 0   ;;  %s1515_s29 = smov 0  }
   0xe LB: > { %1865 = sst [smem:[#allocation19_spill]] %s1448_s28  ;;  %s1536_s30 = sadd.s32 4294967295, %s1452_s29   ;;  %s1452_s29 = sphi %s1515_s29, %s31_s29   ;;  %s1448_s28 = sphi %s1513_s28, %s1890_s28   ;;  %s1444_s27 = sphi %s1511_s27, %s1889_s27   ;;  %s1440_s26 = sphi %s1509_s26, %s1893_s26   ;;  %s1436_s25 = sphi %s1507_s25, %s1892_s25   ;;  %s1432_s24 = sphi %s1505_s24, %s1891_s24  }
   0xf   : > { %s994_s8 = sadd.s32 4294967294, %s1452_s29   ;;  %p72_p0 = scmp.ne.s32.totalorder %s1436_s25, %s1432_s24 }
  0x10   : > { %p1856_p1 = scmp.eq.s32.totalorder %s1536_s30, 0  ;;  %p240_p3 = scmp.eq.s32.totalorder %s994_s8, 1 }
  0x11   : > { %p995_p5 = scmp.ge.s32.totalorder %s1452_s29, 1  ;;  %p275_p7 = scmp.lt.s32.totalorder %s1452_s29, 3 }
  0x12   : > { %p1545_p4 = por %p1856_p1, %p72_p0  ;;  %p1550_p6 = por %p240_p3, %p72_p0 }
  0x13   : > { %p1555_p8 = pnand %p995_p5, %p275_p7  ;;  %s1454_s12 = smov [#allocation7]  }
  0x14   : > { %s1866_s9 = scalar_select %p1545_p4, 1, 0 }
  0x15   : > { %s1867_s10 = scalar_select %p1550_p6, 1, 0 }
  0x16   : > { %s1869_s11 = scalar_select %p1555_p8, 1, 0 }
  0x17   : > { %1868 = sst [smem:[#allocation20_spill]] %s1867_s10  ;;  %s291_s13 = sshll.u32 %s1454_s12, 4  ;;  %s1559_s13 = int_to_ptr.vmem [resolvable:$true] %s291_s13 }
  0x18   : > { %p1128_p9 = pneg %p1555_p8  ;;  %s1455_s15 = smov [#allocation8]  }
  0x19   : > { %s308_s16 = sshll.u32 %s1455_s15, 4  ;;  %s1871_s2 = sld [smem:[#allocation23_spill]]  ;;  %s1570_s16 = int_to_ptr.vmem [resolvable:$true] %s308_s16 }
  0x1a   : > { %p1566_p11 = pnand %p1128_p9, %p1856_p1 }
  0x1c   : > { %p1212_p13 = pneg %p1566_p11 }
  0x1f   : > { %s1210_s19 = scalar_lea.hbm %s1871_s2, 512 }
  0x20   : > { %p1211_p12 = scmp.ne.s32.totalorder %s1871_s2, %s1210_s19  ;;  %p1217_p5 = scmp.lt.u32.totalorder %s1210_s19, %s1871_s2 }
  0x22   : > { %p1213_p0 = pnand %p1212_p13, %p1211_p12 }
  0x24   : > { %p1214_p3 = pneg %p1213_p0 }
  0x26   : > { %p1219_p7 = pnand %p1217_p5, %p1214_p3 }
  0x28   : > { %1222 = shalt.err (!%p1219_p7)
}
  0x29   : > { %s1223_s8 = scalar_lea.vmem %s1559_s13, 512  ;;  %p1231_p2 = scmp.lt.s32.totalorder %s1559_s13, %s1559_s13 }
  0x2a   : > { %p1224_p9 = scmp.ne.s32.totalorder %s1559_s13, %s1223_s8  ;;  %p1232_p12 = scmp.lt.s32.totalorder %s1223_s8, %s1223_s8 }
  0x2c   : > { %p1226_p10 = pnand %p1224_p9, %p1212_p13  ;;  %p1233_p0 = por %p1232_p12, %p1231_p2 }
  0x2e   : > { %p1227_p1 = pneg %p1226_p10 }
  0x30   : > { %p1234_p6 = pnand %p1233_p0, %p1227_p1 }
  0x32   : > { %1237 = shalt.err (!%p1234_p6)
}
  0x33   : > { %s1456_s12 = smov 128   ;;  %s1457_s15 = smov 8  }
  0x34   : > { %1131 = dma.hbm_to_vmem [thread:$0]  (!%p1566_p11), %s1871_s2, 512, %s1559_s13, [#allocation6], %s1456_s12, %s1456_s12, %s1457_s15  }
  0x35   : > { %s1872_s3 = sld [smem:[#allocation24_spill]] }
  0x3b   : > { %s1238_s21 = scalar_lea.hbm %s1872_s3, 512 }
  0x3c   : > { %p1239_p2 = scmp.ne.s32.totalorder %s1872_s3, %s1238_s21  ;;  %p1245_p10 = scmp.lt.u32.totalorder %s1238_s21, %s1872_s3 }
  0x3e   : > { %p1241_p1 = pnand %p1239_p2, %p1212_p13 }
  0x40   : > { %p1242_p6 = pneg %p1241_p1 }
  0x42   : > { %p1247_p3 = pnand %p1245_p10, %p1242_p6 }
  0x44   : > { %1250 = shalt.err (!%p1247_p3)
}
  0x45   : > { %s1251_s13 = scalar_lea.vmem %s1570_s16, 512  ;;  %p1259_p12 = scmp.lt.s32.totalorder %s1570_s16, %s1570_s16 }
  0x46   : > { %p1252_p5 = scmp.ne.s32.totalorder %s1570_s16, %s1251_s13  ;;  %p1260_p0 = scmp.lt.s32.totalorder %s1251_s13, %s1251_s13 }
  0x48   : > { %p1254_p7 = pnand %p1252_p5, %p1212_p13  ;;  %p1261_p2 = por %p1260_p0, %p1259_p12 }
  0x4a   : > { %p1255_p9 = pneg %p1254_p7 }
  0x4c   : > { %p1262_p1 = pnand %p1261_p2, %p1255_p9 }
  0x4e   : > { %1265 = shalt.err (!%p1262_p1)
}
  0x4f   : > { %1134 = dma.hbm_to_vmem [thread:$0]  (!%p1566_p11), %s1872_s3, 512, %s1570_s16, [#allocation9], %s1456_s12, %s1456_s12, %s1457_s15  }
  0x50   : > { %s50_s18 = sadd.s32 1, %s1448_s28  ;;  %s59_s19 = sadd.s32 1, %s1440_s26 }
  0x51   : > { %p52_p13 = scmp.ge.s32.totalorder %s50_s18, 2  ;;  %p66_p6 = scmp.ne.s32.totalorder %s1440_s26, %s1436_s25 }
  0x52   : > { %p67_p10 = scmp.eq.s32.totalorder %s1452_s29, 0  ;;  %p1151_p3 = scmp.lt.s32.totalorder %s1452_s29, 2 }
  0x53   : > { %s1895_s18 = smov (%p52_p13, %s50_s18), 0  ;;  %p1874_p7 = scmp.eq.s32.totalorder %s1536_s30, 1 }
  0x54   : > { %1873 = sst [smem:[#allocation21_spill]] %s1895_s18  ;;  %p68_p5 = por %p67_p10, %p66_p6 }
  0x55   : > { %p1634_p9 = por %p1874_p7, %p66_p6  ;;  %s54_s20 = ssub.s32 %s1448_s28, %s1895_s18 }
  0x56   : > { %s334_s21 = sand.u32 1, %s1440_s26   ;;  %p57_p12 = scmp.eq.s32.totalorder %s54_s20, 0 }
  0x57   : > { %s1875_s14 = scalar_select %p1634_p9, 1, 0 }
  0x58   : > { %s1641_s16 = sshll.u32 %s334_s21, 3  ;;  %s1002_s12 = sshll.u32 %s1448_s28, 7 }
  0x59   : > { %s1645_s15 = scalar_select %p57_p12, %s1440_s26, %s59_s19  }
  0x5a   : > { %s1650_s8 = scalar_lea.hbm %s1848_s0, %s1002_s12  ;;  %s338_s13 = scalar_lea.vmem [#allocation2], %s1641_s16 }
  0x5b   : > { %1876 = sst [smem:[#allocation22_spill]] %s1645_s15  ;;  %s346_s10 = sshll.u32 %s338_s13, 4  ;;  %s1659_s10 = int_to_ptr.vmem [resolvable:$true] %s346_s10 }
  0x5c   : > { %p1655_p11 = pnand %p1151_p3, %p68_p5  ;;  %s1664_s22 = scalar_lea.hbm %s1849_s1, %s1002_s12 }
  0x5d   : > { %s335_s23 = scalar_lea.sflag [#allocation3], %s334_s21  ;;  %s1266_s2 = scalar_lea.hbm %s1650_s8, 128 }
  0x5e   : > { %p1267_p0 = scmp.ne.s32.totalorder %s1650_s8, %s1266_s2  ;;  %p1268_p2 = pneg %p1655_p11 }
  0x5f   : > { %s1271_s18 = scalar_lea.hbm %s1848_s0, 256  ;;  %p1272_p6 = scmp.lt.u32.totalorder %s1650_s8, %s1848_s0 }
  0x60   : > { %p1269_p1 = pnand %p1268_p2, %p1267_p0  ;;  %p1273_p10 = scmp.lt.u32.totalorder %s1271_s18, %s1266_s2 }
  0x61   : > { %p1275_p5 = scmp.lt.u32.totalorder %s1266_s2, %s1650_s8 }
  0x62   : > { %p1270_p13 = pneg %p1269_p1  ;;  %p1274_p3 = por %p1273_p10, %p1272_p6 }
  0x64   : > { %p1276_p7 = por %p1275_p5, %p1274_p3 }
  0x66   : > { %p1277_p12 = pnand %p1276_p7, %p1270_p13 }
  0x68   : > { %1280 = shalt.err (!%p1277_p12)
}
  0x69   : > { %s1281_s21 = scalar_lea.vmem %s1659_s10, 128  ;;  %s1458_s3 = smov [#allocation2]  }
  0x6a   : > { %p1282_p0 = scmp.ne.s32.totalorder %s1659_s10, %s1281_s21  ;;  %s1286_s12 = sshll.u32 %s1458_s3, 4  ;;  %s1287_s12 = int_to_ptr.vmem [resolvable:$false] %s1286_s12 }
  0x6b   : > { %s1288_s28 = scalar_lea.vmem %s1287_s12, 256  ;;  %p1289_p4 = scmp.lt.s32.totalorder %s1659_s10, %s1287_s12 }
  0x6c   : > { %p1284_p1 = pnand %p1282_p0, %p1268_p2  ;;  %p1290_p6 = scmp.lt.s32.totalorder %s1288_s28, %s1281_s21 }
  0x6e   : > { %p1285_p9 = pneg %p1284_p1  ;;  %p1291_p10 = por %p1290_p6, %p1289_p4 }
  0x70   : > { %p1292_p3 = pnand %p1291_p10, %p1285_p9 }
  0x72   : > { %1295 = shalt.err (!%p1292_p3)
}
  0x73   : > { %1138 = dma.hbm_to_vmem [thread:$0]  (!%p1655_p11), %s1650_s8, 128, %s1659_s10, %s335_s23  }
  0x74   : > { %s353_s2 = sand.u32 1, %s1452_s29   ;;  %s357_s18 = scalar_lea.vmem [#allocation5], %s1641_s16 }
  0x75   : > { %s365_s15 = sshll.u32 %s357_s18, 4  ;;  %s354_s19 = scalar_lea.sflag [#allocation6], %s353_s2  ;;  %s366_s15 = int_to_ptr.vmem [resolvable:$true] %s365_s15 }
  0x76   : > { %s1296_s20 = scalar_lea.hbm %s1664_s22, 128  ;;  %s1301_s3 = scalar_lea.hbm %s1849_s1, 256 }
  0x77   : > { %p1297_p4 = scmp.ne.s32.totalorder %s1664_s22, %s1296_s20  ;;  %p1302_p5 = scmp.lt.u32.totalorder %s1664_s22, %s1849_s1 }
  0x78   : > { %p1303_p7 = scmp.lt.u32.totalorder %s1301_s3, %s1296_s20  ;;  %p1305_p0 = scmp.lt.u32.totalorder %s1296_s20, %s1664_s22 }
  0x79   : > { %p1299_p9 = pnand %p1297_p4, %p1268_p2 }
  0x7a   : > { %p1304_p12 = por %p1303_p7, %p1302_p5 }
  0x7b   : > { %p1300_p13 = pneg %p1299_p9 }
  0x7c   : > { %p1306_p1 = por %p1305_p0, %p1304_p12 }
  0x7e   : > { %p1307_p6 = pnand %p1306_p1, %p1300_p13 }
  0x80   : > { %1310 = shalt.err (!%p1307_p6)
}
  0x81   : > { %s1311_s16 = scalar_lea.vmem %s366_s15, 128  ;;  %s1459_s8 = smov [#allocation5]  }
  0x82   : > { %p1312_p10 = scmp.ne.s32.totalorder %s366_s15, %s1311_s16  ;;  %s1316_s10 = sshll.u32 %s1459_s8, 4  ;;  %s1317_s10 = int_to_ptr.vmem [resolvable:$false] %s1316_s10 }
  0x83   : > { %s1318_s23 = scalar_lea.vmem %s1317_s10, 256  ;;  %p1319_p9 = scmp.lt.s32.totalorder %s366_s15, %s1317_s10 }
  0x84   : > { %p1314_p3 = pnand %p1312_p10, %p1268_p2  ;;  %p1320_p8 = scmp.lt.s32.totalorder %s1318_s23, %s1311_s16 }
  0x86   : > { %p1315_p4 = pneg %p1314_p3  ;;  %p1321_p5 = por %p1320_p8, %p1319_p9 }
  0x88   : > { %p1322_p7 = pnand %p1321_p5, %p1315_p4 }
  0x8a   : > { %1325 = shalt.err (!%p1322_p7)
}
  0x8b   : > { %1141 = dma.hbm_to_vmem [thread:$0]  (!%p1655_p11), %s1664_s22, 128, %s366_s15, %s354_s19  }
  0x8c   : > { %p1878_p13 = scmp.ne.s32.totalorder %s1869_s11, 0 }
  0x8d   : > { %s1715_s2 = sand.u32 (!%p1878_p13), 1, %s1436_s25   ;;  %p1879_p8 = scmp.ne.s32.totalorder (!%p1878_p13), %s1866_s9, 0 }
  0x8e   : > { %374 = sbr.rel (%p1878_p13) target bundleno = 426 (0x1aa), region = 44  ;;  %s1718_s18 = sshll.u32 (!%p1878_p13), %s1715_s2, 3 }
  0x8f   : > { %s377_s20 = scalar_lea.sflag (!%p1878_p13), [#allocation3], %s1715_s2  ;;  %s380_s13 = scalar_lea.vmem (!%p1878_p13), [#allocation2], %s1718_s18 }
  0x95   : > { %1407 = dma.done.wait (%p1879_p8), %s377_s20, 128  }
  0x96   : > { %1409 = vsyncadd (%p1879_p8), %s377_s20, 4294967168  ;;  %s385_s11 = sand.u32 1, %s1536_s30   ;;  %s389_s22 = scalar_lea.vmem [#allocation5], %s1718_s18 }
  0x97   : > { %s386_s17 = scalar_lea.sflag [#allocation6], %s385_s11 }
  0x98   : > { %1411 = dma.done.wait (%p1879_p8), %s386_s17, 128  }
  0x99   : > { %1413 = vsyncadd (%p1879_p8), %s386_s17, 4294967168  ;;  %p1880_p11 = scmp.eq.s32.totalorder %s1536_s30, 0 }
  0x9b   : > { %1415 = dma.done.wait (%p1880_p11), [#allocation6], 512   ;;  %p1881_p2 = pmov %p1880_p11 }
  0x9d   : > { %1417 = vsyncadd (%p1881_p2), [#allocation6], 4294966784  ;;  %p1882_p12 = pmov %p1881_p2 }
  0x9e   : > { %p1883_p0 = pmov %p1881_p2 }
  0x9f   : > { %1419 = dma.done.wait (%p1882_p12), [#allocation9], 512  }
  0xa0   : > { %1421 = vsyncadd (%p1883_p0), [#allocation9], 4294966784  ;;  %v1460_v0 = vmov 0.0|0.0   ;;  %vm1461_vm0 = vmmov 0   ;;  %v1462_v1 = vmov 0.0   ;;  %v454_v2 = vld [vmem:[#allocation7] sm:$0xff] }
  0xa1   : > { %1088 = vmatprep.subr.bf16.mxu0 %v1460_v0  ;;  %1094 = vmatprep.subr.bf16.mxu1 %v1460_v0  ;;  %v455_v3 = vld [vmem:[#allocation7 + $0x8] sm:$0xff]  ;;  %v458_v4 = vld [vmem:[#allocation8] sm:$0xff]  ;;  %v456_v7 = vld [vmem:[#allocation7 + $0x10] sm:$0xff]  ;;  %vm462_vm1 = vcmask 261120   ;;  %s1020_s15 = sshll.u32 %s1444_s27, 7  ;;  %s436_s19 = scalar_lea.vmem [#allocation10], %s1718_s18 }
  0xa2   : > { %1052 = vmatprep.mubr.msk.f32.mxu0 %vm1461_vm0, %v1462_v1  ;;  %1063 = vmatprep.mubr.msk.f32.mxu1 %vm1461_vm0, %v1462_v1  ;;  %v1089_v5 = vpack.c.bf16 %v455_v3, %v454_v2  ;;  %v459_v6 = vld [vmem:[#allocation8 + $0x8] sm:$0xff]  ;;  %v457_v8 = vld [vmem:[#allocation7 + $0x18] sm:$0xff]  ;;  %v460_v10 = vld [vmem:[#allocation8 + $0x10] sm:$0xff]  ;;  %s788_s21 = sshll.u32 %s436_s19, 4  ;;  %s1762_s28 = scalar_lea.hbm %s1854_s6, %s1020_s15  ;;  %s1764_s21 = int_to_ptr.vmem [resolvable:$true] %s788_s21 }
  0xa3   : > { %v1095_v9 = vpack.c.bf16 %v459_v6, %v458_v4  ;;  %v461_v11 = vld [vmem:[#allocation8 + $0x18] sm:$0xff]  ;;  %v1092_v12 = vpack.c.bf16 %v457_v8, %v456_v7  ;;  %v452_v14 = vld [vmem:[%s380_s13] sm:$0xff]  ;;  %s769_s16 = scalar_lea.sflag [#allocation4], %s1715_s2  ;;  %s1326_s8 = scalar_lea.vmem %s1764_s21, 128 }
  0xa4   : > { %1090 = vmatpush3.bf16.msra.mxu0 %v1089_v5  ;;  %v1098_v13 = vpack.c.bf16 %v461_v11, %v460_v10  ;;  %v453_v15 = vld [vmem:[%s389_s22] sm:$0xff]  ;;  %v1016_v18 = vld [vmem:[%s1852_s4] ss:$0 sm:$0xff]  ;;  %p1327_p1 = scmp.ne.s32.totalorder %s1764_s21, %s1326_s8  ;;  %p1884_p6 = scmp.ne.s32.totalorder %s1875_s14, 0 }
  0xa5   : > { %1096 = vmatpush3.bf16.msra.mxu1 %v1095_v9  ;;  %1091 = vmatprep.subr.bf16.mxu0 %v1460_v0  ;;  %s1463_s10 = smov [#allocation10]  }
  0xa6   : > { %1097 = vmatprep.subr.bf16.mxu1 %v1460_v0  ;;  %p1328_p10 = pnand %p1327_p1, %p1884_p6  ;;  %s1330_s23 = sshll.u32 %s1463_s10, 4  ;;  %s1331_s23 = int_to_ptr.vmem [resolvable:$false] %s1330_s23 }
  0xa7   : > { %s1332_s20 = scalar_lea.vmem %s1331_s23, 256  ;;  %p1333_p4 = scmp.lt.s32.totalorder %s1764_s21, %s1331_s23 }
  0xa8   : > { %1093 = vmatpush3.bf16.msra.mxu0 %v1092_v12  ;;  %p1329_p3 = pneg %p1328_p10  ;;  %p1334_p9 = scmp.lt.s32.totalorder %s1332_s20, %s1326_s8 }
  0xa9   : > { %1099 = vmatpush3.bf16.msra.mxu1 %v1098_v13  ;;  %1100 = vmatprep.subr.bf16.mxu0 %v1460_v0 }
  0xaa   : > { %1106 = vmatprep.subr.bf16.mxu1 %v1460_v0  ;;  %p1335_p5 = por %p1334_p9, %p1333_p4 }
  0xab   : > { %1053 = vmatmul.mubr.msk.f32.vlgmr.msra.gmra.mrb[0].mxu0 %vm462_vm1, %v452_v14 }
  0xac   : > { %1064 = vmatmul.mubr.msk.f32.vlgmr.msra.gmra.mrb[0].mxu1 %vm462_vm1, %v453_v15  ;;  %1102 = vmatpush3.bf16.msra.mxu0 %v1095_v9  ;;  %p1336_p7 = pnand %p1335_p5, %p1329_p3 }
  0xad   : > { %1108 = vmatpush3.bf16.msra.mxu1 %v1089_v5  ;;  %1103 = vmatprep.subr.bf16.mxu0 %v1460_v0 }
  0xae   : > { %1109 = vmatprep.subr.bf16.mxu1 %v1460_v0  ;;  %1074 = vmatprep.mubr.msk.f32.mxu0 %vm1461_vm0, %v1462_v1 }
  0xaf   : > { %1085 = vmatprep.mubr.msk.f32.mxu1 %vm1461_vm0, %v1462_v1 }
  0xb0   : > { %1105 = vmatpush3.bf16.msra.mxu0 %v1098_v13 }
  0xb1   : > { %1111 = vmatpush3.bf16.msra.mxu1 %v1092_v12 }
  0xb3   : > { %1075 = vmatmul.mubr.msk.f32.vlgmr.msra.gmra.mrb[2].mxu0 %vm462_vm1, %v452_v14 }
  0xb4   : > { %1086 = vmatmul.mubr.msk.f32.vlgmr.msra.gmra.mrb[2].mxu1 %vm462_vm1, %v453_v15 }
 0x17e   : > { %v532_v16 = vpop.f32.mrb[0].mxu0 }
 0x17f   : > { %v605_v17 = vpop.f32.mrb[0].mxu1  ;;  %v1054_v19 = vpop.f32.mrb[1].mxu0 }
 0x180   : > { %v609_v20 = vsub.f32 %v532_v16, %v605_v17  ;;  %v1065_v21 = vpop.f32.mrb[1].mxu1 }
 0x182   : > { %v757_v22 = vadd.f32 %v1016_v18, %v609_v20 }
 0x184   : > { %766 = vst.msk [vmem:[%s436_s19] sm:$0xff] %vm462_vm1, %v757_v22 }
 0x185   : > { %1339 = shalt.err (!%p1336_p7)
}
 0x186   : > { %s1340_s13 = scalar_lea.hbm %s1762_s28, 128  ;;  %s1344_s22 = scalar_lea.hbm %s1854_s6, 256 }
 0x187   : > { %p1341_p13 = scmp.ne.s32.totalorder %s1762_s28, %s1340_s13  ;;  %p1345_p2 = scmp.lt.u32.totalorder %s1762_s28, %s1854_s6 }
 0x188   : > { %p1346_p12 = scmp.lt.u32.totalorder %s1344_s22, %s1340_s13  ;;  %p1348_p1 = scmp.lt.u32.totalorder %s1340_s13, %s1762_s28 }
 0x189   : > { %p1342_p8 = pnand %p1341_p13, %p1884_p6 }
 0x18a   : > { %p1347_p0 = por %p1346_p12, %p1345_p2 }
 0x18b   : > { %p1343_p11 = pneg %p1342_p8 }
 0x18c   : > { %p1349_p10 = por %p1348_p1, %p1347_p0 }
 0x18e   : > { %p1350_p3 = pnand %p1349_p10, %p1343_p11 }
 0x190   : > { %1353 = shalt.err (!%p1350_p3)
}
 0x191   : > { %1124 = dma.vmem_to_hbm [thread:$0]  (%p1884_p6), %s1764_s21, 128, %s1762_s28, %s769_s16   ;;  %v676_v23 = vpop.f32.mrb[2].mxu0  ;;  %v746_v24 = vpop.f32.mrb[2].mxu1  ;;  %v1017_v25 = vld [vmem:[%s1853_s5] ss:$0 sm:$0xff] }
 0x192   : > { %v1076_v26 = vpop.f32.mrb[3].mxu0  ;;  %s443_s12 = scalar_lea.vmem [#allocation11], %s1718_s18  ;;  %v747_v27 = vadd.f32 %v746_v24, %v676_v23  ;;  %v1087_v28 = vpop.f32.mrb[3].mxu1  ;;  %s1798_s20 = scalar_lea.hbm %s1855_s7, %s1020_s15 }
 0x193   : > { %s802_s8 = sshll.u32 %s443_s12, 4  ;;  %s774_s21 = scalar_lea.sflag [#allocation12], %s1715_s2  ;;  %s1800_s8 = int_to_ptr.vmem [resolvable:$true] %s802_s8 }
 0x194   : > { %v765_v29 = vadd.f32 %v1017_v25, %v747_v27  ;;  %s1354_s28 = scalar_lea.vmem %s1800_s8, 128  ;;  %s1464_s18 = smov [#allocation11]  }
 0x195   : > { %p1355_p4 = scmp.ne.s32.totalorder %s1800_s8, %s1354_s28  ;;  %s1358_s27 = sshll.u32 %s1464_s18, 4  ;;  %s1359_s27 = int_to_ptr.vmem [resolvable:$false] %s1358_s27 }
 0x196   : > { %767 = vst.msk [vmem:[%s443_s12] sm:$0xff] %vm462_vm1, %v765_v29  ;;  %s1360_s16 = scalar_lea.vmem %s1359_s27, 256  ;;  %p1361_p7 = scmp.lt.s32.totalorder %s1800_s8, %s1359_s27 }
 0x197   : > { %p1356_p9 = pnand %p1355_p4, %p1884_p6  ;;  %p1362_p13 = scmp.lt.s32.totalorder %s1360_s16, %s1354_s28 }
 0x199   : > { %p1357_p5 = pneg %p1356_p9  ;;  %p1363_p8 = por %p1362_p13, %p1361_p7 }
 0x19b   : > { %p1364_p11 = pnand %p1363_p8, %p1357_p5 }
 0x19d   : > { %1367 = shalt.err (!%p1364_p11)
}
 0x19e   : > { %s1368_s2 = scalar_lea.hbm %s1798_s20, 128  ;;  %s1372_s11 = scalar_lea.hbm %s1855_s7, 256 }
 0x19f   : > { %p1369_p2 = scmp.ne.s32.totalorder %s1798_s20, %s1368_s2  ;;  %p1373_p1 = scmp.lt.u32.totalorder %s1798_s20, %s1855_s7 }
 0x1a0   : > { %p1374_p10 = scmp.lt.u32.totalorder %s1372_s11, %s1368_s2  ;;  %p1376_p4 = scmp.lt.u32.totalorder %s1368_s2, %s1798_s20 }
 0x1a1   : > { %p1370_p12 = pnand %p1369_p2, %p1884_p6 }
 0x1a2   : > { %p1375_p3 = por %p1374_p10, %p1373_p1 }
 0x1a3   : > { %p1371_p0 = pneg %p1370_p12 }
 0x1a4   : > { %p1377_p9 = por %p1376_p4, %p1375_p3 }
 0x1a6   : > { %p1378_p5 = pnand %p1377_p9, %p1371_p0 }
 0x1a8   : > { %1381 = shalt.err (!%p1378_p5)
}
 0x1a9   : > { %1125 = dma.vmem_to_hbm [thread:$0]  (%p1884_p6), %s1800_s8, 128, %s1798_s20, %s774_s21  }
 0x1aa PF: > { %s1885_s30 = sld [smem:[#allocation20_spill]]  ;;  %s814_s9 = sand.u32 1, %s1432_s24  }
 0x1ab   : > { %p1887_p13 = scmp.ge.s32.totalorder %s1452_s29, 2  ;;  %s815_s19 = scalar_lea.sflag [#allocation4], %s814_s9 }
 0x1b0   : > { %p1886_p7 = scmp.ne.s32.totalorder %s1885_s30, 0 }
 0x1b2   : > { %p1143_p8 = pnand %p1887_p13, %p1886_p7 }
 0x1b4   : > { %1423 = dma.done.wait (!%p1143_p8), %s815_s19, 128  }
 0x1b5   : > { %1425 = vsyncadd (!%p1143_p8), %s815_s19, 4294967168  ;;  %s824_s3 = scalar_lea.sflag [#allocation12], %s814_s9 }
 0x1b6   : > { %1427 = dma.done.wait (!%p1143_p8), %s824_s3, 128  }
 0x1b7   : > { %1429 = vsyncadd (!%p1143_p8), %s824_s3, 4294967168  ;;  %s31_s29 = sadd.s32 1, %s1452_s29   ;;  %s1888_s14 = sld [smem:[#allocation22_spill]] }
 0x1b8   : > { %p28_p11 = scmp.ge.s32.totalorder %s31_s29, 4   ;;  %s1889_s27 = sld [smem:[#allocation19_spill]] }
 0x1b9   : > { %s1890_s28 = sld [smem:[#allocation21_spill]]  ;;  %s1891_s24 = smov %s1436_s25 }
 0x1ba   : > { %s1892_s25 = smov %s1440_s26  ;;  %30 = sbr.rel (!%p28_p11) target bundleno = 14 (0xe), region = 135 }
 0x1bd   : > { %s1893_s26 = smov %s1888_s14 }
 0x1c1   :  { %829 = vsyncpa [#allocation3], 1 }
 0x1c2   :  { %831 = vsyncpa [#allocation3 + $0x1], 1 }
 0x1c3   :  { %832 = vsyncpa [#allocation6], 1 }
 0x1c4   :  { %834 = vsyncpa [#allocation6 + $0x1], 1 }
 0x1c5   :  { %835 = vsyncpa [#allocation9], 1 }
 0x1c6   :  { %836 = vsyncpa [#allocation4], 1 }
 0x1c7   :  { %838 = vsyncpa [#allocation4 + $0x1], 1 }
 0x1c8   :  { %839 = vsyncpa [#allocation12], 1 }
 0x1c9   :  { %841 = vsyncpa [#allocation12 + $0x1], 1 }

</bundles_post_ra>
